<compile_context>
chip_gen: v6e
topology: v6e:2x2x1
jax: 0.10.0
libtpu: 0.0.40
codegen_flags: <defaults>
</compile_context>

<pallas_src>
import functools

import jax
import jax.numpy as jnp
from jax.experimental import pallas as pl
from jax.experimental.pallas import tpu as pltpu


def _round_up(x, m):
    return (x + m - 1) // m * m


def _vmem_budget_bytes():
    """~3/4 of physical VMEM: ~96 MiB on 128 MiB v5e/v6e, ~48 MiB on 64 MiB v7x."""
    cap = 128 * 1024 * 1024
    try:
        info = pltpu.get_tpu_info()
        cap = int(getattr(info, "vmem_capacity_bytes", cap))
    except Exception:
        pass
    return (cap * 3) // 4


def _linear_kernel_resident(x_ref, wt_ref, b_ref, o_ref, *, cout):
    # x_ref : (TM, Cin)      tile of feature rows
    # wt_ref: (Cin, CoutP)   transposed weight, VMEM resident (single buffer)
    # b_ref : (1, CoutP)     f32 bias row (pre-cast once in prepare step)
    # o_ref : (TM, Cout)     UNPADDED output tile (full last-dim extent)
    acc = jnp.dot(x_ref[...], wt_ref[...], preferred_element_type=jnp.float32)
    acc = acc + b_ref[...]
    o_ref[...] = acc[:, :cout].astype(o_ref.dtype)


def _linear_kernel_couttiled(x_ref, wt_ref, b_ref, o_ref):
    # x_ref : (TM, Cin)   feats tile; block index (i, 0) -> not re-DMA'd across j
    # wt_ref: (Cin, TN)   weight column tile
    # b_ref : (1, TN)     f32 bias tile
    # o_ref : (TM, TN)    ragged trailing row/col blocks masked by Pallas
    acc = jnp.dot(x_ref[...], wt_ref[...], preferred_element_type=jnp.float32)
    o_ref[...] = (acc + b_ref[...]).astype(o_ref.dtype)


def prepare_linear_params(weight_t, bias=None):
    """One-time parameter prep (call at init, NOT per forward).

    weight_t : (Cin, Cout)   linear weight pre-transposed (== torch weight.T)
    bias     : (Cout,) or None
    Returns (weight_padded (Cin, CoutP), bias_f32 (1, CoutP), out_features).
    CoutP = Cout rounded up to a multiple of 128 so the MXU operand / resident
    VMEM tile is lane aligned; the kernel OUTPUT itself is never padded.
    """
    cin, cout = weight_t.shape
    cout_p = _round_up(cout, 128)
    if bias is None:
        bias = jnp.zeros((cout,), dtype=weight_t.dtype)
    if cout_p != cout:
        weight_t = jnp.pad(weight_t, ((0, 0), (0, cout_p - cout)))
        bias = jnp.pad(bias, (0, cout_p - cout))
    bias_f32 = bias.astype(jnp.float32).reshape(1, cout_p)
    return weight_t, bias_f32, cout


@functools.partial(
    jax.jit,
    static_argnames=("out_features", "out_dtype", "force_cout_tiling", "tile_cols"),
)
def minkowski_linear(feats, weight_p, bias_p, *, out_features, out_dtype=None,
                     force_cout_tiling=False, tile_cols=None):
    """MinkowskiLinear forward on the feature matrix of a sparse tensor.

    feats        : (N, Cin)      input.F (features of active coordinates)
    weight_p     : (Cin, CoutP)  from prepare_linear_params (padded, transposed)
    bias_p       : (1, CoutP)    f32, from prepare_linear_params
    out_features : true Cout (CoutP may be padded up to a multiple of 128)
    returns      : (N, Cout)
    """
    n, cin = feats.shape
    cout_p = weight_p.shape[1]
    cout = out_features

    in_dt = jnp.dtype(feats.dtype)
    w_dt = jnp.dtype(weight_p.dtype)
    if out_dtype is None:
        # Keep float feature dtypes; promote int8/fp8 features to f32 so the
        # f32 accumulator + bias is not truncated back to a narrow dtype.
        if jnp.issubdtype(in_dt, jnp.floating) and in_dt.itemsize >= 2:
            out_dtype = in_dt
        else:
            out_dtype = jnp.float32
    out_dt = jnp.dtype(out_dtype)
    # TODO(synk): on v7x the MXU has no integer path; int8 features should be
    # dequantized to bf16/fp8 upstream of this kernel on that generation.

    budget = _vmem_budget_bytes()
    slack = 2 * 1024 * 1024  # headroom for Mosaic internal scratch

    # Sublane packing of the row tile (f32: 8, bf16: 16, int8/fp8: 32).
    sublane = max(8, 32 // in_dt.itemsize, 32 // out_dt.itemsize)

    w_bytes = cin * cout_p * w_dt.itemsize       # single-buffered (Buffered(1))
    b_bytes = cout_p * 4
    feats_bufs = 2                               # default double-buffered stream

    use_cout_tiling = force_cout_tiling or (w_bytes + b_bytes > budget // 2)

    if not use_cout_tiling:
        # ---- Path A: whole (padded) weight resident in VMEM, 1-D row grid ----
        per_row = feats_bufs * cin * in_dt.itemsize + 2 * cout * out_dt.itemsize
        avail = max(budget - w_bytes - b_bytes - slack, 0)
        tm = min(2048, max(avail // per_row, sublane), _round_up(n, sublane))
        tm = max(sublane, (tm // sublane) * sublane)

        need = (feats_bufs * tm * cin * in_dt.itemsize
                + 2 * tm * cout * out_dt.itemsize + w_bytes + b_bytes)
        vmem_limit = (min(int(need * 5 // 4) + slack, budget)
                      if need > 30 * 1024 * 1024 else None)

        grid = (pl.cdiv(n, tm),)   # ragged last row block masked by Pallas
        kernel = functools.partial(_linear_kernel_resident, cout=cout)
        in_specs = [
            pl.BlockSpec((tm, cin), lambda i: (i, 0)),
            # Grid-invariant operands: single buffer (no wasted double buffer).
            pl.BlockSpec((cin, cout_p), lambda i: (0, 0),
                         pipeline_mode=pl.Buffered(1)),
            pl.BlockSpec((1, cout_p), lambda i: (0, 0),
                         pipeline_mode=pl.Buffered(1)),
        ]
        out_specs = pl.BlockSpec((tm, cout), lambda i: (i, 0))
        dim_sem = ("parallel",)
    else:
        # ---- Path B: tile Cout so the weight never has to be fully resident ----
        tn = tile_cols if tile_cols is not None else 512  # mult of 256 (v6e/v7x MXU)
        tn = min(_round_up(tn, 128), cout_p)
        while 2 * cin * tn * w_dt.itemsize > budget // 2 and tn > 128:
            tn //= 2
        tn = max(128, (tn // 128) * 128)

        resident = 2 * (cin * tn * w_dt.itemsize + tn * 4)  # weight+bias tiles, 2-buf
        per_row = feats_bufs * cin * in_dt.itemsize + 2 * tn * out_dt.itemsize
        avail = max(budget - resident - slack, 0)
        tm = min(2048, max(avail // per_row, sublane), _round_up(n, sublane))
        tm = max(sublane, (tm // sublane) * sublane)

        need = (feats_bufs * tm * cin * in_dt.itemsize
                + 2 * tm * tn * out_dt.itemsize + resident)
        vmem_limit = (min(int(need * 5 // 4) + slack, budget)
                      if need > 30 * 1024 * 1024 else None)

        # Cout axis innermost: feats block index (i, 0) is unchanged across j,
        # so the row tile is not re-DMA'd while streaming weight column tiles.
        grid = (pl.cdiv(n, tm), pl.cdiv(cout_p, tn))
        kernel = _linear_kernel_couttiled
        in_specs = [
            pl.BlockSpec((tm, cin), lambda i, j: (i, 0)),
            pl.BlockSpec((cin, tn), lambda i, j: (0, j)),
            pl.BlockSpec((1, tn), lambda i, j: (0, j)),
        ]
        out_specs = pl.BlockSpec((tm, tn), lambda i, j: (i, j))
        dim_sem = ("parallel", "arbitrary")

    cost = pl.CostEstimate(
        flops=2 * n * cin * cout,
        transcendentals=0,
        bytes_accessed=(n * cin * in_dt.itemsize
                        + cin * cout_p * w_dt.itemsize
                        + cout_p * 4
                        + n * cout * out_dt.itemsize),
    )

    return pl.pallas_call(
        kernel,
        out_shape=jax.ShapeDtypeStruct((n, cout), out_dt),
        grid_spec=pltpu.PrefetchScalarGridSpec(
            num_scalar_prefetch=0,
            grid=grid,
            in_specs=in_specs,
            out_specs=out_specs,
        ),
        compiler_params=pltpu.CompilerParams(
            dimension_semantics=dim_sem,
            vmem_limit_bytes=vmem_limit,
        ),
        cost_estimate=cost,
    )(feats, weight_p, bias_p)


def init_linear_params(key, in_features, out_features, dtype=jnp.float32):
    """Mirror torch.nn.Linear default init (uniform +/- 1/sqrt(fan_in)).

    Returns the weight laid out as (Cin, Cout) (== torch weight.T) so no
    transpose pass is needed per call.
    """
    kw, kb = jax.random.split(key)
    bound = 1.0 / (in_features ** 0.5)
    weight_t = jax.random.uniform(
        kw, (in_features, out_features), dtype, minval=-bound, maxval=bound
    )
    bias = jax.random.uniform(
        kb, (out_features,), dtype, minval=-bound, maxval=bound
    )
    return weight_t, bias


if __name__ == "__main__":
    key = jax.random.PRNGKey(0)
    k1, k2, k3, k4 = jax.random.split(key, 4)

    # --- Case 1: resident-weight path (ragged rows, Cout not a multiple of 128).
    N, IN_FEATURES, OUT_FEATURES = 19, 32, 24
    feats = jax.random.normal(k1, (N, IN_FEATURES), dtype=jnp.float32)
    weight_t, bias = init_linear_params(k2, IN_FEATURES, OUT_FEATURES)
    weight_p, bias_p, out_features = prepare_linear_params(weight_t, bias)  # one-time prep

    # TODO(synk): coords_key / coords_manager passthrough has no compute; only input.F is transformed.
    out = minkowski_linear(feats, weight_p, bias_p, out_features=out_features)
    out = jax.block_until_ready(out)

    ref = feats @ weight_t + bias
    assert out.shape == (N, OUT_FEATURES)
    assert jnp.allclose(out, ref, atol=3e-5, rtol=3e-5)

    # --- Case 2: Cout-tiled path (forced here; auto-selected for large Cin*Cout).
    N2, IN2, OUT2 = 70, 64, 300
    feats2 = jax.random.normal(k3, (N2, IN2), dtype=jnp.float32)
    weight_t2, bias2 = init_linear_params(k4, IN2, OUT2)
    weight_p2, bias_p2, of2 = prepare_linear_params(weight_t2, bias2)
    out2 = minkowski_linear(feats2, weight_p2, bias_p2, out_features=of2,
                            force_cout_tiling=True, tile_cols=128)
    out2 = jax.block_until_ready(out2)

    ref2 = feats2 @ weight_t2 + bias2
    assert out2.shape == (N2, OUT2)
    assert jnp.allclose(out2, ref2, atol=3e-5, rtol=3e-5)

    print("KERNEL_OK")
</pallas_src>

<mosaic_0001>
module attributes {stable_mosaic.version = 11 : i64} {
  func.func @_linear_kernel_resident(%arg0: i32, %arg1: memref<24x32xf32, #tpu.memory_space<vmem>>, %arg2: memref<32x128xf32, #tpu.memory_space<vmem>>, %arg3: memref<1x128xf32, #tpu.memory_space<vmem>>, %arg4: memref<24x24xf32, #tpu.memory_space<vmem>>) attributes {dimension_semantics = [#tpu.dimension_semantics<parallel>], iteration_bounds = array<i64: 1>, scalar_prefetch = 0 : i64, scratch_operands = 0 : i64, tpu.core_type = #tpu.core_type<tc>, window_params = [{transform_indices = @transform_0, window_bounds = array<i64: 24, 32>}, {pipeline_mode = #tpu.pipeline_mode<synchronous>, transform_indices = @transform_1, window_bounds = array<i64: 32, 128>}, {pipeline_mode = #tpu.pipeline_mode<synchronous>, transform_indices = @transform_2, window_bounds = array<i64: 1, 128>}, {transform_indices = @transform_3, window_bounds = array<i64: 24, 24>}]} {
    %c0 = arith.constant 0 : index
    %c0_0 = arith.constant 0 : index
    %0 = vector.load %arg1[%c0, %c0_0] : memref<24x32xf32, #tpu.memory_space<vmem>>, vector<24x32xf32>
    %c0_1 = arith.constant 0 : index
    %c0_2 = arith.constant 0 : index
    %1 = vector.load %arg2[%c0_1, %c0_2] : memref<32x128xf32, #tpu.memory_space<vmem>>, vector<32x128xf32>
    %cst = arith.constant dense<0.000000e+00> : vector<24x128xf32>
    %2 = tpu.matmul %0, %1, %cst {dimension_numbers = #tpu.dot_dimension_numbers<[1], [0], [0], [1], [0, 0, 1, 1], [], []>} : vector<24x32xf32>, vector<32x128xf32>, vector<24x128xf32> -> vector<24x128xf32>
    %c0_3 = arith.constant 0 : index
    %c0_4 = arith.constant 0 : index
    %3 = vector.load %arg3[%c0_3, %c0_4] : memref<1x128xf32, #tpu.memory_space<vmem>>, vector<1x128xf32>
    %4 = vector.broadcast %3 : vector<1x128xf32> to vector<24x128xf32>
    %5 = arith.addf %2, %4 : vector<24x128xf32>
    %6 = vector.extract_strided_slice %5 {offsets = [0, 0], sizes = [24, 24], strides = [1, 1]} : vector<24x128xf32> to vector<24x24xf32>
    %c0_5 = arith.constant 0 : index
    %c0_6 = arith.constant 0 : index
    %7 = vector.load %arg4[%c0_5, %c0_6] : memref<24x24xf32, #tpu.memory_space<vmem>>, vector<24x24xf32>
    tpu.vector_store %arg4[%c0_5, %c0_6], %6 {strides = array<i32>} : memref<24x24xf32, #tpu.memory_space<vmem>>, vector<24x24xf32>,
    return
  }
  func.func @transform_0(%arg0: i32) -> (i32, i32) {
    %c0_i32 = arith.constant 0 : i32
    %c0_i32_0 = arith.constant 0 : i32
    return %arg0, %c0_i32 : i32, i32
  }
  func.func @transform_1(%arg0: i32) -> (i32, i32) {
    %c0_i32 = arith.constant 0 : i32
    %c0_i32_0 = arith.constant 0 : i32
    %c0_i32_1 = arith.constant 0 : i32
    return %c0_i32, %c0_i32_0 : i32, i32
  }
  func.func @transform_2(%arg0: i32) -> (i32, i32) {
    %c0_i32 = arith.constant 0 : i32
    %c0_i32_0 = arith.constant 0 : i32
    %c0_i32_1 = arith.constant 0 : i32
    return %c0_i32, %c0_i32_0 : i32, i32
  }
  func.func @transform_3(%arg0: i32) -> (i32, i32) {
    %c0_i32 = arith.constant 0 : i32
    %c0_i32_0 = arith.constant 0 : i32
    return %arg0, %c0_i32 : i32, i32
  }
}

</mosaic_0001>

<bundles_post_ra>
// kernel: minkowski_linear.1
= control target key start
LH: loop header
LB: loop body
LE: loop exit
PB: predicated region body
PF: predicated region fallthrough
CT: control target
= control target key end

     0   :  { %8 = vsyncpa [#allocation3], 0  ;;  %s329_s0 = inlined_call_operand.hbm [shape: f32[19,32], index: 0, kind: input, shape index: {}]   ;;  %s330_s1 = inlined_call_operand.hbm [shape: f32[32,128], index: 1, kind: input, shape index: {}]   ;;  %s331_s2 = inlined_call_operand.vmem [shape: f32[1,128], index: 2, kind: input, shape index: {}]   ;;  %s332_s3 = inlined_call_operand.hbm [shape: f32[19,24], index: 3, kind: output, shape index: {}]  }
   0x1   :  { %9 = vsyncpa [#allocation6], 0 }
   0x2   :  { %10 = vsyncpa [#allocation4], 0  ;;  %s278_s12 = smov [#allocation2]  }
   0x3   :  { %s16_s13 = sshll.u32 %s278_s12, 4  ;;  %s17_s13 = int_to_ptr.vmem [resolvable:$true] %s16_s13 }
   0x4   :  { %s220_s14 = scalar_lea.vmem %s17_s13, 384  ;;  %p225_p1 = scmp.lt.s32.totalorder %s17_s13, %s17_s13 }
   0x5   :  { %p221_p0 = scmp.ne.s32.totalorder %s17_s13, %s220_s14  ;;  %p226_p2 = scmp.lt.s32.totalorder %s220_s14, %s220_s14 }
   0x7   :  { %p227_p3 = por %p226_p2, %p225_p1 }
   0x9   :  { %p228_p4 = pnand %p227_p3, %p221_p0 }
   0xb   :  { %231 = shalt.err (!%p228_p4)
}
   0xc   :  { %s279_s15 = smov 128   ;;  %s280_s16 = smov 8  }
   0xd   :  { %22 = dma.hbm_to_vmem [thread:$0]  %s329_s0, 384, %s17_s13, [#allocation3], %s279_s15, %s279_s15, %s280_s16  }
   0xe   :  { %s281_s19 = smov [#allocation5]  }
   0xf   :  { %s28_s20 = sshll.u32 %s281_s19, 4  ;;  %s29_s20 = int_to_ptr.vmem [resolvable:$true] %s28_s20 }
  0x10   :  { %s240_s21 = scalar_lea.vmem %s29_s20, 512  ;;  %p245_p6 = scmp.lt.s32.totalorder %s29_s20, %s29_s20 }
  0x11   :  { %p241_p5 = scmp.ne.s32.totalorder %s29_s20, %s240_s21  ;;  %p246_p7 = scmp.lt.s32.totalorder %s240_s21, %s240_s21 }
  0x13   :  { %p247_p8 = por %p246_p7, %p245_p6 }
  0x15   :  { %p248_p9 = pnand %p247_p8, %p241_p5 }
  0x17   :  { %251 = shalt.err (!%p248_p9)
}
  0x18   :  { %34 = dma.hbm_to_vmem [thread:$0]  %s330_s1, 512, %s29_s20, [#allocation6], %s279_s15, %s279_s15, %s280_s16  }
  0x19   :  { %272 = dma.done.wait [#allocation3], 384  }
  0x1a   :  { %273 = vsyncadd [#allocation3], 4294966912 }
  0x1b   :  { %274 = dma.done.wait [#allocation6], 512  }
  0x1c   :  { %275 = vsyncadd [#allocation6], 4294966784  ;;  %v282_v0 = vmov 0.0   ;;  %vm283_vm0 = vmmov 0   ;;  %v49_v1 = vld [vmem:[#allocation5 + $0x18] sm:$0xff]  ;;  %v48_v2 = vld [vmem:[#allocation5 + $0x10] sm:$0xff] }
  0x1d   :  { %197 = vmatprep.subr.mxu1 %v282_v0  ;;  %180 = vmatprep.subr.mxu0 %v282_v0  ;;  %v47_v3 = vld [vmem:[#allocation5 + $0x8] sm:$0xff]  ;;  %v46_v4 = vld [vmem:[#allocation5] sm:$0xff]  ;;  %v44_v5 = vld [vmem:[#allocation2 + $0x8] sm:$0xff]  ;;  %vm57_vm1 = vcmask 261120   ;;  %vm147_vm2 = vcmask 195584   ;;  %s284_s24 = smov [#allocation7]  }
  0x1e   :  { %191 = vmatprep.mubr.msk.f32.mxu1 %vm283_vm0, %v282_v0  ;;  %188 = vmatprep.mubr.msk.f32.mxu0 %vm283_vm0, %v282_v0  ;;  %v43_v6 = vld [vmem:[#allocation2] sm:$0xff]  ;;  %v45_v7 = vld [vmem:[#allocation2 + $0x10] sm:$0xff]  ;;  %s156_s25 = sshll.u32 %s284_s24, 4  ;;  %s157_s25 = int_to_ptr.vmem [resolvable:$true] %s156_s25 }
  0x1f   :  { %201 = vmatpush3.msra.mxu1 %v49_v1  ;;  %181 = vmatpush3.msra.mxu0 %v49_v1  ;;  %v169_v8 = vld [vmem:[%s331_s2] ss:$0 sm:$0xff]  ;;  %s252_s26 = scalar_lea.vmem %s157_s25, 384  ;;  %p257_p11 = scmp.lt.s32.totalorder %s157_s25, %s157_s25 }
  0x20   :  { %198 = vmatprep.subr.mxu1 %v282_v0  ;;  %182 = vmatprep.subr.mxu0 %v282_v0  ;;  %p253_p10 = scmp.ne.s32.totalorder %s157_s25, %s252_s26  ;;  %p258_p12 = scmp.lt.s32.totalorder %s252_s26, %s252_s26 }
  0x21   :  { %202 = vmatpush3.msra.mxu1 %v48_v2  ;;  %183 = vmatpush3.msra.mxu0 %v48_v2 }
  0x22   :  { %199 = vmatprep.subr.mxu1 %v282_v0  ;;  %184 = vmatprep.subr.mxu0 %v282_v0  ;;  %p259_p13 = por %p258_p12, %p257_p11 }
  0x23   :  { %203 = vmatpush3.msra.mxu1 %v47_v3  ;;  %185 = vmatpush3.msra.mxu0 %v47_v3 }
  0x24   :  { %200 = vmatprep.subr.mxu1 %v282_v0  ;;  %186 = vmatprep.subr.mxu0 %v282_v0  ;;  %p260_p0 = pnand %p259_p13, %p253_p10 }
  0x25   :  { %204 = vmatpush3.msra.mxu1 %v46_v4  ;;  %187 = vmatpush3.msra.mxu0 %v46_v4 }
  0x26   :  { %192 = vmatmul.mubr.msk.f32.vlgmr.msra.gmra.mxu1 %vm57_vm1, %v44_v5  ;;  %189 = vmatmul.mubr.msk.f32.vlgmr.msra.gmra.mxu0 %vm57_vm1, %v43_v6 }
  0x27   :  { %194 = vmatprep.mubr.msk.f32.mxu1 %vm283_vm0, %v282_v0 }
  0x2a   :  { %195 = vmatmul.mubr.msk.f32.gmra.mxu1 %vm57_vm1, %v45_v7 }
  0xe6   :  { %v138_v9 = vpop.f32.mrf.mxu1  ;;  %v133_v10 = vpop.f32.mrf.mxu0 }
  0xe7   :  { %v139_v11 = vadd.f32 %v169_v8, %v138_v9  ;;  %v134_v12 = vadd.f32 %v169_v8, %v133_v10 }
  0xe8   :  { %v193_v13 = vpop.f32.mrf.mxu1  ;;  %v190_v14 = vpop.f32.mrf.mxu0 }
  0xe9   :  { %149 = vst.msk [vmem:[#allocation7 + $0x8] sm:$0xff] %vm147_vm2, %v139_v11  ;;  %148 = vst.msk [vmem:[#allocation7] sm:$0xff] %vm147_vm2, %v134_v12 }
  0xea   :  { %v143_v15 = vpop.f32.mrf.mxu1 }
  0xeb   :  { %v144_v16 = vadd.f32 %v169_v8, %v143_v15 }
  0xec   :  { %v196_v17 = vpop.f32.mrf.mxu1 }
  0xed   :  { %150 = vst.msk [vmem:[#allocation7 + $0x10] sm:$0xff] %vm147_vm2, %v144_v16 }
  0xee   :  { %263 = shalt.err (!%p260_p0)
}
  0xef   :  { %162 = dma.vmem_to_hbm [thread:$0]  %s157_s25, 384, %s332_s3, [#allocation4], %s279_s15, %s279_s15, %s280_s16  }
  0xf0   :  { %276 = dma.done.wait [#allocation4], 384  }
  0xf1   :  { %277 = vsyncadd [#allocation4], 4294966912 }
  0xf2   :  { %166 = vsyncpa [#allocation3], 1 }
  0xf3   :  { %167 = vsyncpa [#allocation6], 1 }
  0xf4   :  { %168 = vsyncpa [#allocation4], 1 }

</bundles_post_ra>
